<compile_context>
chip_gen: v7x
topology: tpu7x:2x2x1
jax: 0.10.0
libtpu: 0.0.40
codegen_flags: <defaults>
</compile_context>

<pallas_src>
import functools

import jax
import jax.numpy as jnp
from jax import lax
from jax.experimental import pallas as pl
from jax.experimental.pallas import tpu as pltpu


def _vmem_capacity_bytes() -> int:
    """Best-effort physical VMEM capacity; conservative (v7x-sized) fallback."""
    try:
        info = pltpu.get_tpu_info()
        cap = getattr(info, "vmem_capacity_bytes", None)
        if cap:
            return int(cap)
    except Exception:
        pass
    return 64 * 1024 * 1024


def _has_megacore() -> bool:
    """True on devices exposing 2 TensorCores per JAX device (v4 megacore, v7x)."""
    try:
        kind = jax.devices()[0].device_kind.lower()
    except Exception:
        return False
    return ("v4" in kind) or ("v5p" in kind) or ("v7" in kind)


def _ce_partial_sum_kernel(idx_ref, logits_ref, out_ref, *, n_valid):
    """Accumulate the cross-entropy row-loss sum of one (tile_n, C) block.

    idx_ref    : (tile_n, 1)  int32   VMEM — target class per row
    logits_ref : (tile_n, C)  native  VMEM — logits (partial last block holds garbage rows)
    out_ref    : (1, 1)       float32 SMEM — partial sum for this parallel chunk
    """
    p = pl.program_id(0)            # parallel chunk (megacore axis)
    t = pl.program_id(1)            # reduction step within the chunk

    @pl.when(t == 0)
    def _init():
        out_ref[0, 0] = jnp.float32(0.0)

    x = logits_ref[...]                         # native dtype (e.g. bf16)
    idx = idx_ref[...]                          # (tile_n, 1) int32
    tn, c = x.shape

    # (1, C) lane iota broadcast against (tile_n, 1) idx -> no (tile_n, C) int32 temp.
    col_ids = lax.broadcasted_iota(jnp.int32, (1, c), 1)
    is_tgt = col_ids == idx                     # (tile_n, C) bool

    # Target logit and row max in the *native* dtype (both exact; bf16 VALU on v6e/v7x).
    target = jnp.sum(jnp.where(is_tgt, x, 0), axis=-1,
                     keepdims=True).astype(jnp.float32)
    row_max = jnp.max(x, axis=-1, keepdims=True).astype(jnp.float32)

    # Numerically-stable logsumexp in f32.
    shifted = x.astype(jnp.float32) - row_max
    lse = jnp.log(jnp.sum(jnp.exp(shifted), axis=-1, keepdims=True))

    per_row = (row_max + lse) - target          # (tile_n, 1) f32

    # Discard rows past the true N (partial last block / phantom megacore tiles).
    # Use a select, NOT a multiply, so NaN/Inf garbage cannot poison the accumulator.
    row0 = (p * pl.num_programs(1) + t) * tn
    row_ids = lax.broadcasted_iota(jnp.int32, (tn, 1), 0) + row0
    per_row = jnp.where(row_ids < n_valid, per_row, 0.0)

    out_ref[0, 0] += jnp.sum(per_row)


def self_clustering_loss(indices, inverse_distances, num_classes=None, *,
                         block_rows=None):
    """JAX/Pallas equivalent of SelfClusteringLoss.forward (mean cross-entropy).

    indices           : (N,) integer class labels (assumed in-range; no ignore_index)
    inverse_distances : (N, C) logits, any float dtype (kept native; cast in-kernel)
    returns           : scalar float32 mean cross-entropy loss
    """
    del num_classes  # unused by nn.CrossEntropyLoss, kept for signature parity
    n, c = inverse_distances.shape

    logits = inverse_distances
    if not jnp.issubdtype(logits.dtype, jnp.floating):
        logits = logits.astype(jnp.float32)
    itemsize = jnp.dtype(logits.dtype).itemsize

    idx2d = indices.astype(jnp.int32).reshape(n, 1)

    # ---------------- tile-size heuristic (HBM-streaming, VMEM-budgeted) -------------
    # Sublane alignment by dtype packing (f32: 8, bf16: 16, 8-bit: 32).
    align = {4: 8, 2: 16, 1: 32}.get(itemsize, 8)

    # Generation-aware scoped-VMEM limit: half the physical capacity, capped at 64 MiB
    # (=> 32 MiB on v7x's 64 MiB VMEM, 64 MiB on v5e/v6e's 128 MiB).
    vmem_limit = min(64 * 1024 * 1024, _vmem_capacity_bytes() // 2)
    budget = (vmem_limit * 3) // 4

    # Per-row VMEM cost: double-buffered native logits block + ~6 f32-sized in-kernel
    # temporaries (+ native select result + bool mask) + the lane-padded (tile_n, 1)
    # int32 index block (128 lanes x 4 B x 2 buffers).
    bytes_per_row = 2 * c * itemsize + c * (6 * 4 + itemsize + 1) + 2 * 128 * 4
    tile_n = (budget // bytes_per_row) // align * align
    tile_n = max(align, min(tile_n, 16384))
    if block_rows is not None:
        tile_n = max(align, (block_rows // align) * align)
    if n <= tile_n:
        tile_n = n          # single block; block dim == full array dim is always legal
    # TODO(synk): for very large C (tile_n pinned at `align` and still over budget) the
    # class axis should also be tiled with an online (running-max) logsumexp.

    n_tiles = -(-n // tile_n)
    n_par = 2 if (_has_megacore() and n_tiles >= 2) else 1
    tiles_per_chunk = -(-n_tiles // n_par)

    if n_par == 1:
        tile_idx = lambda p, t: (t, 0)
    else:
        # Clamp phantom tiles of the last parallel chunk back in range; their
        # contribution is zeroed in-kernel via the global row-id check.
        tile_idx = lambda p, t: (jnp.minimum(p * tiles_per_chunk + t, n_tiles - 1), 0)

    kernel = functools.partial(_ce_partial_sum_kernel, n_valid=n)

    partial_sums = pl.pallas_call(
        kernel,
        out_shape=jax.ShapeDtypeStruct((n_par, 1), jnp.float32),
        grid_spec=pltpu.PrefetchScalarGridSpec(
            num_scalar_prefetch=0,
            grid=(n_par, tiles_per_chunk),
            in_specs=[
                pl.BlockSpec((tile_n, 1), tile_idx),
                pl.BlockSpec((tile_n, c), tile_idx),   # last dim == full C: no HBM pad
            ],
            out_specs=pl.BlockSpec((1, 1), lambda p, t: (p, 0),
                                   memory_space=pltpu.SMEM),
        ),
        compiler_params=pltpu.CompilerParams(
            dimension_semantics=("parallel", "arbitrary"),
            vmem_limit_bytes=vmem_limit,
        ),
    )(idx2d, logits)

    # Global-N mean as a constant multiply (never the per-tile row count).
    return jnp.sum(partial_sums) * jnp.float32(1.0 / n)


def _reference_loss(indices, inverse_distances):
    """Pure-JAX reference (matches torch.nn.CrossEntropyLoss, mean reduction)."""
    logits = inverse_distances.astype(jnp.float32)
    logz = jax.scipy.special.logsumexp(logits, axis=-1)
    target = jnp.take_along_axis(
        logits, indices[:, None].astype(jnp.int32), axis=-1)[:, 0]
    return jnp.mean(logz - target)


if __name__ == "__main__":
    key = jax.random.PRNGKey(0)
    k1, k2, k3, k4, k5, k6 = jax.random.split(key, 6)

    # Case 1: tiny toy shape (N=8 samples, C=32 classes) — single full block.
    N1, C1 = 8, 32
    idx1 = jax.random.randint(k1, (N1,), 0, C1, dtype=jnp.int32)
    logits1 = jax.random.normal(k2, (N1, C1), dtype=jnp.float32)
    out1 = jax.block_until_ready(self_clustering_loss(idx1, logits1, num_classes=C1))
    ref1 = jax.block_until_ready(_reference_loss(idx1, logits1))
    assert jnp.allclose(out1, ref1, rtol=1e-5, atol=1e-5), (out1, ref1)

    # Case 2: bf16 input, ragged N and C, forced small tile — exercises the multi-tile
    # reduction axis and the masked partial last block (no HBM padding anywhere).
    N2, C2 = 200, 40
    idx2 = jax.random.randint(k3, (N2,), 0, C2, dtype=jnp.int32)
    logits2 = jax.random.normal(k4, (N2, C2), dtype=jnp.bfloat16)
    out2 = jax.block_until_ready(
        self_clustering_loss(idx2, logits2, num_classes=C2, block_rows=64))
    ref2 = jax.block_until_ready(_reference_loss(idx2, logits2))
    assert jnp.allclose(out2, ref2, rtol=1e-4, atol=1e-4), (out2, ref2)

    # Case 3: f32, N not a multiple of 8 — partial last block with f32 masking.
    N3, C3 = 77, 96
    idx3 = jax.random.randint(k5, (N3,), 0, C3, dtype=jnp.int32)
    logits3 = jax.random.normal(k6, (N3, C3), dtype=jnp.float32)
    out3 = jax.block_until_ready(
        self_clustering_loss(idx3, logits3, num_classes=C3, block_rows=32))
    ref3 = jax.block_until_ready(_reference_loss(idx3, logits3))
    assert jnp.allclose(out3, ref3, rtol=1e-5, atol=1e-5), (out3, ref3)

    print("KERNEL_OK")
</pallas_src>

<mosaic_0001>
module attributes {stable_mosaic.version = 11 : i64} {
  func.func @_ce_partial_sum_kernel(%arg0: i32, %arg1: i32, %arg2: memref<8x1xi32, #tpu.memory_space<vmem>>, %arg3: memref<8x32xf32, #tpu.memory_space<vmem>>, %arg4: memref<1x1xf32, #tpu.memory_space<smem>>) attributes {dimension_semantics = [#tpu.dimension_semantics<parallel>, #tpu.dimension_semantics<arbitrary>], iteration_bounds = array<i64: 1, 1>, scalar_prefetch = 0 : i64, scratch_operands = 0 : i64, tpu.core_type = #tpu.core_type<tc>, window_params = [{transform_indices = @transform_0, window_bounds = array<i64: 8, 1>}, {transform_indices = @transform_1, window_bounds = array<i64: 8, 32>}, {transform_indices = @transform_2, window_bounds = array<i64: 1, 1>}]} {
    %c0_i32 = arith.constant 0 : i32
    %0 = arith.cmpi eq, %arg1, %c0_i32 : i32
    %1 = arith.extui %0 : i1 to i32
    %c0_i32_0 = arith.constant 0 : i32
    %2 = arith.cmpi ne, %1, %c0_i32_0 : i32
    scf.if %2 {
      %cst_14 = arith.constant 0.000000e+00 : f32
      %c0_15 = arith.constant 0 : index
      %c0_16 = arith.constant 0 : index
      %41 = memref.load %arg4[%c0_15, %c0_16] : memref<1x1xf32, #tpu.memory_space<smem>>
      memref.store %cst_14, %arg4[%c0_15, %c0_16] : memref<1x1xf32, #tpu.memory_space<smem>>
    } else {
    }
    %c0 = arith.constant 0 : index
    %c0_1 = arith.constant 0 : index
    %3 = vector.load %arg3[%c0, %c0_1] : memref<8x32xf32, #tpu.memory_space<vmem>>, vector<8x32xf32>
    %c0_2 = arith.constant 0 : index
    %c0_3 = arith.constant 0 : index
    %4 = vector.load %arg2[%c0_2, %c0_3] : memref<8x1xi32, #tpu.memory_space<vmem>>, vector<8x1xi32>
    %5 = tpu.iota {dimensions = array<i32: 1>} : vector<1x32xi32>
    %6 = vector.broadcast %5 : vector<1x32xi32> to vector<8x32xi32>
    %7 = vector.broadcast %4 : vector<8x1xi32> to vector<8x32xi32>
    %8 = arith.cmpi eq, %6, %7 : vector<8x32xi32>
    %c0_i32_4 = arith.constant 0 : i32
    %9 = arith.sitofp %c0_i32_4 : i32 to f32
    %10 = vector.broadcast %9 : f32 to vector<8x32xf32>
    %11 = arith.select %8, %3, %10 : vector<8x32xi1>, vector<8x32xf32>
    %cst = arith.constant dense<0.000000e+00> : vector<8xf32>
    %12 = vector.multi_reduction <add>, %11, %cst [1] : vector<8x32xf32> to vector<8xf32>
    %13 = vector.shape_cast %12 : vector<8xf32> to vector<8x1xf32>
    %cst_5 = arith.constant dense<0xFF800000> : vector<8xf32>
    %14 = vector.multi_reduction <maximumf>, %3, %cst_5 [1] : vector<8x32xf32> to vector<8xf32>
    %15 = vector.shape_cast %14 : vector<8xf32> to vector<8x1xf32>
    %16 = vector.broadcast %15 : vector<8x1xf32> to vector<8x32xf32>
    %17 = arith.subf %3, %16 : vector<8x32xf32>
    %18 = math.exp %17 : vector<8x32xf32>
    %cst_6 = arith.constant dense<0.000000e+00> : vector<8xf32>
    %19 = vector.multi_reduction <add>, %18, %cst_6 [1] : vector<8x32xf32> to vector<8xf32>
    %20 = vector.shape_cast %19 : vector<8xf32> to vector<8x1xf32>
    %21 = math.log %20 : vector<8x1xf32>
    %22 = arith.addf %15, %21 : vector<8x1xf32>
    %23 = arith.subf %22, %13 : vector<8x1xf32>
    %c1_i32 = arith.constant 1 : i32
    %24 = arith.muli %arg0, %c1_i32 : i32
    %25 = arith.addi %24, %arg1 : i32
    %c8_i32 = arith.constant 8 : i32
    %26 = arith.muli %25, %c8_i32 : i32
    %27 = tpu.iota {dimensions = array<i32: 0>} : vector<8x1xi32>
    %28 = vector.broadcast %26 : i32 to vector<8x1xi32>
    %29 = arith.addi %27, %28 : vector<8x1xi32>
    %c8_i32_7 = arith.constant 8 : i32
    %30 = vector.broadcast %c8_i32_7 : i32 to vector<8x1xi32>
    %31 = arith.cmpi slt, %29, %30 : vector<8x1xi32>
    %cst_8 = arith.constant 0.000000e+00 : f32
    %32 = vector.broadcast %cst_8 : f32 to vector<8x1xf32>
    %33 = arith.select %31, %23, %32 : vector<8x1xi1>, vector<8x1xf32>
    %c0_9 = arith.constant 0 : index
    %c0_10 = arith.constant 0 : index
    %34 = memref.load %arg4[%c0_9, %c0_10] : memref<1x1xf32, #tpu.memory_space<smem>>
    %35 = vector.shape_cast %33 : vector<8x1xf32> to vector<1x8x1xf32>
    %cst_11 = arith.constant dense<0.000000e+00> : vector<1xf32>
    %36 = vector.multi_reduction <add>, %35, %cst_11 [1, 2] : vector<1x8x1xf32> to vector<1xf32>
    %37 = vector.shape_cast %36 : vector<1xf32> to vector<1x1x1xf32>
    %38 = vector.extract %37[0, 0, 0] : f32 from vector<1x1x1xf32>
    %39 = arith.addf %34, %38 : f32
    %c0_12 = arith.constant 0 : index
    %c0_13 = arith.constant 0 : index
    %40 = memref.load %arg4[%c0_12, %c0_13] : memref<1x1xf32, #tpu.memory_space<smem>>
    memref.store %39, %arg4[%c0_12, %c0_13] : memref<1x1xf32, #tpu.memory_space<smem>>
    return
  }
  func.func @transform_0(%arg0: i32, %arg1: i32) -> (i32, i32) {
    %c0_i32 = arith.constant 0 : i32
    %c0_i32_0 = arith.constant 0 : i32
    return %arg1, %c0_i32 : i32, i32
  }
  func.func @transform_1(%arg0: i32, %arg1: i32) -> (i32, i32) {
    %c0_i32 = arith.constant 0 : i32
    %c0_i32_0 = arith.constant 0 : i32
    return %arg1, %c0_i32 : i32, i32
  }
  func.func @transform_2(%arg0: i32, %arg1: i32) -> (i32, i32) {
    %c0_i32 = arith.constant 0 : i32
    %c0_i32_0 = arith.constant 0 : i32
    return %arg0, %c0_i32 : i32, i32
  }
}

</mosaic_0001>

<bundles_post_ra>
// kernel: tpu_custom_call.1
= control target key start
LH: loop header
LB: loop body
LE: loop exit
PB: predicated region body
PF: predicated region fallthrough
CT: control target
= control target key end

     0   :  { %vm27_vm0 = vcmask 261120   ;;  %s140_s0 = inlined_call_operand.vmem [shape: s32[8,1], index: 0, kind: input, shape index: {}]   ;;  %s141_s1 = inlined_call_operand.vmem [shape: f32[8,32], index: 1, kind: input, shape index: {}]   ;;  %s142_s2 = inlined_call_operand.hbm [shape: f32[1,1], index: 2, kind: output, shape index: {}]  }
   0x1   :  { %v18_v0 = vld [vmem:[%s141_s1] sm:$0xff] }
   0x2   :  { %7 = vsyncpa [#allocation3], 0  ;;  %v31_v1 = vsel %vm27_vm0, %v18_v0, -inf  ;;  %v102_v2 = vmov 0   ;;  %v19_v3 = vld [vmem:[%s140_s0] sm:$0xff]  ;;  %v20_v7 = vlaneseq  ;;  %vm53_vm2 = vcmask 7168  }
   0x3   :  { %85 = vset.pattern.permute.xlu0 %v102_v2  ;;  %s90_s14 = scalar_lea.hbm %s142_s2, 16 }
   0x4   :  { %32 = vmax.xlane.f32.xlu0 %v31_v1  ;;  %v21_v8 = vand.u32 127, %v20_v7  ;;  %p91_p0 = scmp.ne.s32.totalorder %s142_s2, %s90_s14  ;;  %p94_p1 = scmp.lt.u32.totalorder %s90_s14, %s142_s2 }
   0x6   :  { %p96_p2 = pnand %p94_p1, %p91_p0 }
  0x1a   :  { %23 = vperm.xlu0 %85, %v19_v3  }
  0x91   :  { %v33_v4 = vpop.xlane.xlu0 %32 }
  0x92   :  { %v34_v5 = vsub.f32 %v18_v0, %v33_v4 }
  0x94   :  { %v35_v6 = vmul.f32 1.442695, %v34_v5 }
  0x96   :  { %86 = vpow2.f32 %v35_v6 }
  0x99   :  { %v24_v9 = vpop.permute.xlu0 %23 }
  0x9a   :  { %vm25_vm1 = vcmp.eq.s32.totalorder %v21_v8, %v24_v9 }
  0x9b   :  { %v26_v11 = vsel %vm25_vm1, %v18_v0, 0.0 }
  0x9c   :  { %v28_v13 = vsel %vm27_vm0, %v26_v11, 0.0 }
  0xa0   :  { %v87_v10 = vpop.eup %86 }
  0xa1   :  { %v37_v12 = vsel %vm27_vm0, %v87_v10, 0.0 }
  0xa2   :  { %38 = vadd.xlane.f32.xlu1 %v37_v12 }
  0xa6   :  { %29 = vadd.xlane.f32.xlu1 %v28_v13 }
 0x12f   :  { %v39_v14 = vpop.xlane.xlu1 %38 }
 0x130   :  { %88 = vlog2.f32 %v39_v14 }
 0x133   :  { %v30_v17 = vpop.xlane.xlu1 %29 }
 0x13a   :  { %v89_v15 = vpop.eup %88 }
 0x13b   :  { %v41_v16 = vmul.f32 0.6931472, %v89_v15 }
 0x13d   :  { %v42_v18 = vadd.f32 %v41_v16, %v33_v4 }
 0x13f   :  { %v43_v19 = vsub.f32 %v42_v18, %v30_v17 }
 0x141   :  { %v54_v20 = vsel %vm53_vm2, %v43_v19, 0.0 }
 0x142   :  { %55 = vadd.xlane.f32.xlu1 %v54_v20 }
 0x1cf   :  { %v56_v21 = vpop.xlane.xlu1 %55 }
 0x1d0   :  { %v57_v22 = vrot.slane %v56_v21, 4 }
 0x1d2   :  { %v58_v23 = vadd.f32 %v57_v22, %v56_v21 }
 0x1d4   :  { %v59_v24 = vrot.slane %v58_v23, 2 }
 0x1d6   :  { %v60_v25 = vadd.f32 %v59_v24, %v58_v23 }
 0x1d8   :  { %v61_v26 = vrot.slane %v60_v25, 1 }
 0x1da   :  { %v62_v27 = vadd.f32 %v61_v26, %v60_v25 }
 0x1dc   :  { %80 = vpush %v62_v27 }
 0x20d   :  { %s81_s0 = spop %80 }
 0x20e   :  { %66 = sst [smem:[#allocation2]] %s81_s0 }
 0x20f   :  { %99 = shalt.err (!%p96_p2)
}
 0x210   :  { %s103_s19 = smov [#allocation2]  }
 0x211   :  { %74 = dma.smem_to_hbm %s103_s19, 16, %s142_s2, [#allocation3]  }
 0x212   :  { %100 = dma.done.wait [#allocation3], 16  }
 0x213   :  { %101 = vsyncadd [#allocation3], 4294967280 }
 0x214   :  { %78 = sfence }
 0x215   :  { %79 = vsyncpa [#allocation3], 1 }

</bundles_post_ra>
